<compile_context>
chip_gen: v7x
topology: tpu7x:2x2x1
jax: 0.10.0
libtpu: 0.0.40
codegen_flags: <defaults>
</compile_context>

<pallas_src>
import jax
import jax.numpy as jnp
from jax import lax
from jax.experimental import pallas as pl
from jax.experimental.pallas import tpu as pltpu


def _make_kernel(score_dtype=None):
    def kernel(s1_ref, s2_ref, u_ref, a_ref):
        s1 = s1_ref[...]          # [Bb, bt1, D]
        s2 = s2_ref[...]          # [Bb, t2,  D]

        lhs = s1 if score_dtype is None else s1.astype(score_dtype)
        rhs = s2 if score_dtype is None else s2.astype(score_dtype)

        # scores = s1 @ s2^T (batched), contracting over D without an explicit
        # transpose of s2 (MXU consumes its natural [t2, D] layout).
        s = lax.dot_general(
            lhs, rhs,
            dimension_numbers=(((2,), (2,)), ((0,), (0,))),
            preferred_element_type=jnp.float32,
        )  # [Bb, bt1, t2] f32

        # First-max argmax over t2 on the raw scores.  Kept as
        # max-reduce -> equality mask -> min-reduce of a lane iota (instead of
        # jnp.argmax) because this lowers to plain VPU/XLU ops on every TPU
        # generation.
        t2 = s.shape[-1]
        col = lax.broadcasted_iota(jnp.int32, s.shape, 2)        # [Bb,bt1,t2]
        row_max = jnp.max(s, axis=-1, keepdims=True)             # [Bb,bt1,1]
        first_idx = jnp.min(jnp.where(s == row_max, col, t2),
                            axis=-1, keepdims=True)              # [Bb,bt1,1]
        # Rows containing NaN leave the sentinel t2 (NaN==NaN is false);
        # PyTorch's softmax -> masked_fill -> argmax selects index 0 for such
        # rows, so map the sentinel to 0 (this also keeps the index in bounds
        # if it is ever reused as a gather index).
        first_idx = jnp.where(first_idx >= t2, 0, first_idx)
        onehot = col == first_idx                                # bool one-hot

        # u = onehot @ s2 selects the argmax row of s2 exactly (0/1 weights,
        # f32 accumulation) -- this is the small-t2 fast path.
        # TODO(synk): for large t2, replace with a row gather of s2 using
        # first_idx (DMA gather / take_along_axis); the one-hot matmul spends
        # Bb*bt1*t2*D MACs and one score-sized operand just to copy bt1 rows.
        u = lax.dot_general(
            onehot.astype(s2.dtype), s2,
            dimension_numbers=(((2,), (1,)), ((0,), (0,))),
            preferred_element_type=jnp.float32,
        )  # [Bb, bt1, D]

        a_ref[...] = onehot.astype(a_ref.dtype)
        u_ref[...] = u.astype(u_ref.dtype)

    return kernel


def _prev_divisor(n, below):
    for d in range(below, 0, -1):
        if n % d == 0:
            return d
    return 1


def _pick_t1_block(t1, cap, sublane):
    """Largest legal t1 block <= cap.

    Prefers MXU-friendly multiples of 256/128, then the sublane packing width
    (16 for 2-byte dtypes, 8 for 4-byte); falls back to the full extent, which
    is always legal under the (8, 128) block rule.
    """
    if t1 <= cap:
        return t1
    for align in (256, 128, max(sublane, 8), 8):
        if align > cap:
            continue
        d = cap - cap % align
        while d >= align:
            if t1 % d == 0:
                return d
            d -= align
    return t1


def _shrink_t1_block(t1, cur):
    """Next smaller divisor of t1 that keeps 8-row sublane alignment."""
    for d in range(cur - 1, 7, -1):
        if t1 % d == 0 and d % 8 == 0:
            return d
    return cur


def _vmem_capacity_bytes():
    # v5e/v6e: 128 MiB per TensorCore, v7x: 64 MiB.  Fall back to the smallest
    # (v7x) figure if the query is unavailable so block picking and
    # vmem_limit_bytes stay safe on every generation.
    try:
        cap = getattr(pltpu.get_tpu_info(), "vmem_capacity_bytes", None)
        if cap:
            return int(cap)
    except Exception:
        pass
    return 64 * 1024 * 1024


def cmatt_align(s1, s2, *, block_b=None, block_t1=None, score_dtype=None,
                a_dtype=None, vmem_budget_bytes=None):
    """s1: [B, t1, D], s2: [B, t2, D] -> (u_tile [B, t1, D], a_like [B, t1, t2]).

    score_dtype: dtype for the score-matmul inputs.  None keeps the input
      dtype (exact, bit-identical argmax to the reference).  jnp.bfloat16 is
      the recommended production setting (~3x MXU throughput, half the vreg
      footprint for the score operands) at the cost of possible argmax flips
      on near-tied scores.
    a_dtype: dtype of the returned one-hot; defaults to s1.dtype to match the
      PyTorch module.  int8 cuts a_like write-back bandwidth 4x.
    """
    B, t1, D = s1.shape
    B2, t2, D2 = s2.shape
    assert B == B2 and D == D2, "s1/s2 batch or hidden dims mismatch"

    itemsize = jnp.dtype(s1.dtype).itemsize
    a_dt = jnp.dtype(a_dtype) if a_dtype is not None else jnp.dtype(s1.dtype)
    sublane = 16 if itemsize == 2 else 8

    vmem_cap = _vmem_capacity_bytes()
    if vmem_budget_bytes is None:
        # ~60% of physical VMEM: ~76 MiB on v5e/v6e (128 MiB), ~38 MiB on v7x
        # (64 MiB).  Large tiles amortize the ~0.35 us/grid-step overhead and
        # push the store/HBM-bound phase toward the roofline while leaving
        # headroom for compiler scratch.
        vmem_budget_bytes = int(0.6 * vmem_cap)

    def footprint(bb, bt1):
        # Double-buffered input/output DMA windows (s2 keeps two buffers even
        # though its block index is constant along the inner axis) ...
        in_b = bb * (bt1 * D + t2 * D) * itemsize
        out_b = bb * bt1 * (D * itemsize + t2 * a_dt.itemsize)
        # ... plus in-kernel intermediates: f32 scores, i32 iota, one-hot cast
        # to s2.dtype for the selection matmul, and the f32 u accumulator.
        temps = bb * bt1 * (t2 * (4 + 4 + itemsize) + D * 4)
        return 2 * (in_b + out_b) + temps

    if block_t1 is None:
        block_t1 = _pick_t1_block(t1, cap=512, sublane=sublane)
    if block_b is None:
        block_b = B
        while block_b > 1 and footprint(block_b, block_t1) > vmem_budget_bytes:
            block_b = _prev_divisor(B, block_b - 1)
    # If a single batch element is still over budget, shrink block_t1 too.
    while footprint(block_b, block_t1) > vmem_budget_bytes:
        nxt = _shrink_t1_block(t1, block_t1)
        if nxt == block_t1:
            break  # cannot shrink legally; rely on the raised vmem limit
        block_t1 = nxt

    assert B % block_b == 0 and t1 % block_t1 == 0

    # NOTE: keep t1 as the *inner* grid axis.  The s2 block index depends only
    # on b, so the pipeline does not re-fetch it between consecutive inner
    # steps; swapping the grid order would re-DMA block_b*t2*D bytes per step.
    grid = (B // block_b, t1 // block_t1)

    # TODO(synk): when t2 or D < 128 the output stores are masked partial
    # stores; a lane-dense (padded) layout or an index/int8 output mode would
    # be the next store-bandwidth lever.
    out_shapes = (
        jax.ShapeDtypeStruct((B, t1, D), s1.dtype),
        jax.ShapeDtypeStruct((B, t1, t2), a_dt),
    )

    grid_spec = pltpu.PrefetchScalarGridSpec(
        num_scalar_prefetch=0,
        grid=grid,
        in_specs=[
            pl.BlockSpec((block_b, block_t1, D), lambda b, i: (b, i, 0)),
            # s2: constant block index along the inner t1 axis -> VMEM resident
            # across inner iterations (re-fetched only on b transitions).
            pl.BlockSpec((block_b, t2, D), lambda b, i: (b, 0, 0)),
        ],
        out_specs=[
            pl.BlockSpec((block_b, block_t1, D), lambda b, i: (b, i, 0)),
            pl.BlockSpec((block_b, block_t1, t2), lambda b, i: (b, i, 0)),
        ],
    )

    # Scoped-VMEM limit derived from the actual footprint (v5e's scoped
    # default is only 16 MiB; v7x has just 64 MiB physical), capped below the
    # physical per-core capacity.
    fp = footprint(block_b, block_t1)
    vmem_limit = int(min(int(0.9 * vmem_cap), max(fp + (8 << 20), 32 << 20)))

    return pl.pallas_call(
        _make_kernel(score_dtype),
        out_shape=out_shapes,
        grid_spec=grid_spec,
        compiler_params=pltpu.CompilerParams(
            dimension_semantics=("parallel", "parallel"),
            vmem_limit_bytes=vmem_limit,
        ),
    )(s1, s2)


def _reference(s1, s2):
    """Pure-JAX reference mirroring the PyTorch module."""
    s = jnp.einsum("btd,bkd->btk", s1, s2)
    a_weight = jax.nn.softmax(s, axis=2)
    a_weight = jnp.where(jnp.isnan(a_weight), 0.0, a_weight)
    arg = jnp.argmax(a_weight, axis=2)
    a_like = jax.nn.one_hot(arg, s2.shape[1], dtype=s1.dtype)
    u_tile = jnp.einsum("btk,bkd->btd", a_like, s2)
    return u_tile, a_like


if __name__ == "__main__":
    # Small shapes implied by the forward: B=2, t1=t2=8 sequence positions,
    # D=32 hidden dim.
    B, t1, t2, D = 2, 8, 8, 32
    key = jax.random.PRNGKey(0)
    k1, k2 = jax.random.split(key)
    s1 = jax.random.normal(k1, (B, t1, D), dtype=jnp.float32)
    s2 = jax.random.normal(k2, (B, t2, D), dtype=jnp.float32)

    u_tile, a_weight_like = cmatt_align(s1, s2)
    jax.block_until_ready((u_tile, a_weight_like))

    u_ref, a_ref = _reference(s1, s2)
    assert u_tile.shape == (B, t1, D)
    assert a_weight_like.shape == (B, t1, t2)
    assert jnp.allclose(u_tile, u_ref, atol=1e-5)
    assert jnp.allclose(a_weight_like, a_ref, atol=1e-5)

    print("KERNEL_OK")
</pallas_src>

<mosaic_0001>
module attributes {stable_mosaic.version = 11 : i64} {
  func.func @kernel(%arg0: i32, %arg1: i32, %arg2: memref<2x8x32xf32, #tpu.memory_space<vmem>>, %arg3: memref<2x8x32xf32, #tpu.memory_space<vmem>>, %arg4: memref<2x8x32xf32, #tpu.memory_space<vmem>>, %arg5: memref<2x8x8xf32, #tpu.memory_space<vmem>>) attributes {dimension_semantics = [#tpu.dimension_semantics<parallel>, #tpu.dimension_semantics<parallel>], iteration_bounds = array<i64: 1, 1>, scalar_prefetch = 0 : i64, scratch_operands = 0 : i64, tpu.core_type = #tpu.core_type<tc>, window_params = [{transform_indices = @transform_0, window_bounds = array<i64: 2, 8, 32>}, {transform_indices = @transform_1, window_bounds = array<i64: 2, 8, 32>}, {transform_indices = @transform_2, window_bounds = array<i64: 2, 8, 32>}, {transform_indices = @transform_3, window_bounds = array<i64: 2, 8, 8>}]} {
    %c0 = arith.constant 0 : index
    %c0_0 = arith.constant 0 : index
    %c0_1 = arith.constant 0 : index
    %0 = vector.load %arg2[%c0, %c0_0, %c0_1] : memref<2x8x32xf32, #tpu.memory_space<vmem>>, vector<2x8x32xf32>
    %c0_2 = arith.constant 0 : index
    %c0_3 = arith.constant 0 : index
    %c0_4 = arith.constant 0 : index
    %1 = vector.load %arg3[%c0_2, %c0_3, %c0_4] : memref<2x8x32xf32, #tpu.memory_space<vmem>>, vector<2x8x32xf32>
    %cst = arith.constant dense<0.000000e+00> : vector<2x8x8xf32>
    %2 = tpu.matmul %0, %1, %cst {dimension_numbers = #tpu.dot_dimension_numbers<[2], [2], [1], [1], [0, 0, 0, 1, 1, 1], [0], [0]>} : vector<2x8x32xf32>, vector<2x8x32xf32>, vector<2x8x8xf32> -> vector<2x8x8xf32>
    %3 = tpu.iota {dimensions = array<i32: 2>} : vector<2x8x8xi32>
    %cst_5 = arith.constant dense<0xFF800000> : vector<2x8xf32>
    %4 = vector.multi_reduction <maximumf>, %2, %cst_5 [2] : vector<2x8x8xf32> to vector<2x8xf32>
    %5 = vector.shape_cast %4 : vector<2x8xf32> to vector<2x8x1xf32>
    %6 = vector.broadcast %5 : vector<2x8x1xf32> to vector<2x8x8xf32>
    %7 = arith.cmpf oeq, %2, %6 : vector<2x8x8xf32>
    %c8_i32 = arith.constant 8 : i32
    %8 = vector.broadcast %c8_i32 : i32 to vector<2x8x8xi32>
    %9 = arith.select %7, %3, %8 : vector<2x8x8xi1>, vector<2x8x8xi32>
    %cst_6 = arith.constant dense<2147483647> : vector<2x8xi32>
    %10 = vector.multi_reduction <minsi>, %9, %cst_6 [2] : vector<2x8x8xi32> to vector<2x8xi32>
    %11 = vector.shape_cast %10 : vector<2x8xi32> to vector<2x8x1xi32>
    %c8_i32_7 = arith.constant 8 : i32
    %12 = vector.broadcast %c8_i32_7 : i32 to vector<2x8x1xi32>
    %13 = arith.cmpi sge, %11, %12 : vector<2x8x1xi32>
    %c0_i32 = arith.constant 0 : i32
    %14 = vector.broadcast %c0_i32 : i32 to vector<2x8x1xi32>
    %15 = arith.select %13, %14, %11 : vector<2x8x1xi1>, vector<2x8x1xi32>
    %16 = vector.broadcast %15 : vector<2x8x1xi32> to vector<2x8x8xi32>
    %17 = arith.cmpi eq, %3, %16 : vector<2x8x8xi32>
    %18 = arith.extui %17 : vector<2x8x8xi1> to vector<2x8x8xi32>
    %19 = arith.sitofp %18 : vector<2x8x8xi32> to vector<2x8x8xf32>
    %cst_8 = arith.constant dense<0.000000e+00> : vector<2x8x32xf32>
    %20 = tpu.matmul %19, %1, %cst_8 {dimension_numbers = #tpu.dot_dimension_numbers<[2], [1], [1], [2], [0, 0, 0, 1, 1, 2], [0], [0]>} : vector<2x8x8xf32>, vector<2x8x32xf32>, vector<2x8x32xf32> -> vector<2x8x32xf32>
    %21 = arith.extui %17 : vector<2x8x8xi1> to vector<2x8x8xi32>
    %22 = arith.sitofp %21 : vector<2x8x8xi32> to vector<2x8x8xf32>
    %c0_9 = arith.constant 0 : index
    %c0_10 = arith.constant 0 : index
    %c0_11 = arith.constant 0 : index
    %23 = vector.load %arg5[%c0_9, %c0_10, %c0_11] : memref<2x8x8xf32, #tpu.memory_space<vmem>>, vector<2x8x8xf32>
    tpu.vector_store %arg5[%c0_9, %c0_10, %c0_11], %22 {strides = array<i32>} : memref<2x8x8xf32, #tpu.memory_space<vmem>>, vector<2x8x8xf32>,
    %c0_12 = arith.constant 0 : index
    %c0_13 = arith.constant 0 : index
    %c0_14 = arith.constant 0 : index
    %24 = vector.load %arg4[%c0_12, %c0_13, %c0_14] : memref<2x8x32xf32, #tpu.memory_space<vmem>>, vector<2x8x32xf32>
    tpu.vector_store %arg4[%c0_12, %c0_13, %c0_14], %20 {strides = array<i32>} : memref<2x8x32xf32, #tpu.memory_space<vmem>>, vector<2x8x32xf32>,
    return
  }
  func.func @transform_0(%arg0: i32, %arg1: i32) -> (i32, i32, i32) {
    %c0_i32 = arith.constant 0 : i32
    %c0_i32_0 = arith.constant 0 : i32
    return %arg0, %arg1, %c0_i32 : i32, i32, i32
  }
  func.func @transform_1(%arg0: i32, %arg1: i32) -> (i32, i32, i32) {
    %c0_i32 = arith.constant 0 : i32
    %c0_i32_0 = arith.constant 0 : i32
    %c0_i32_1 = arith.constant 0 : i32
    return %arg0, %c0_i32, %c0_i32_0 : i32, i32, i32
  }
  func.func @transform_2(%arg0: i32, %arg1: i32) -> (i32, i32, i32) {
    %c0_i32 = arith.constant 0 : i32
    %c0_i32_0 = arith.constant 0 : i32
    return %arg0, %arg1, %c0_i32 : i32, i32, i32
  }
  func.func @transform_3(%arg0: i32, %arg1: i32) -> (i32, i32, i32) {
    %c0_i32 = arith.constant 0 : i32
    %c0_i32_0 = arith.constant 0 : i32
    return %arg0, %arg1, %c0_i32 : i32, i32, i32
  }
}

</mosaic_0001>

<bundles_post_ra>
// kernel: tpu_custom_call.1
= control target key start
LH: loop header
LB: loop body
LE: loop exit
PB: predicated region body
PF: predicated region fallthrough
CT: control target
= control target key end

     0   :  { %9 = vsyncpa [#allocation3], 0  ;;  %s693_s0 = inlined_call_operand.hbm [shape: f32[2,8,32], index: 0, kind: input, shape index: {}]   ;;  %s694_s1 = inlined_call_operand.hbm [shape: f32[2,8,32], index: 1, kind: input, shape index: {}]   ;;  %s695_s2 = inlined_call_operand.hbm [shape: f32[2,8,32], index: 2, kind: output, shape index: {0}]   ;;  %s696_s3 = inlined_call_operand.hbm [shape: f32[2,8,8], index: 3, kind: output, shape index: {1}]  }
   0x1   :  { %10 = vsyncpa [#allocation6], 0 }
   0x2   :  { %11 = vsyncpa [#allocation4], 0 }
   0x3   :  { %12 = vsyncpa [#allocation9], 0  ;;  %s577_s12 = smov [#allocation2]   ;;  %s481_s16 = scalar_lea.hbm %s693_s0, 256 }
   0x4   :  { %s18_s13 = sshll.u32 %s577_s12, 4  ;;  %p482_p0 = scmp.ne.s32.totalorder %s693_s0, %s481_s16  ;;  %s19_s13 = int_to_ptr.vmem [resolvable:$true] %s18_s13 }
   0x5   :  { %p485_p1 = scmp.lt.u32.totalorder %s481_s16, %s693_s0 }
   0x7   :  { %p487_p2 = pnand %p485_p1, %p482_p0 }
   0x9   :  { %490 = shalt.err (!%p487_p2)
}
   0xa   :  { %s491_s21 = scalar_lea.vmem %s19_s13, 256  ;;  %p496_p4 = scmp.lt.s32.totalorder %s19_s13, %s19_s13 }
   0xb   :  { %p492_p3 = scmp.ne.s32.totalorder %s19_s13, %s491_s21  ;;  %p497_p5 = scmp.lt.s32.totalorder %s491_s21, %s491_s21 }
   0xd   :  { %p498_p6 = por %p497_p5, %p496_p4 }
   0xf   :  { %p499_p7 = pnand %p498_p6, %p492_p3 }
  0x11   :  { %502 = shalt.err (!%p499_p7)
}
  0x12   :  { %s578_s22 = smov 128   ;;  %s579_s23 = smov 8  }
  0x13   :  { %24 = dma.hbm_to_vmem [thread:$0]  %s693_s0, 256, %s19_s13, [#allocation3], %s578_s22, %s578_s22, %s579_s23  }
  0x14   :  { %s580_s26 = smov [#allocation5]   ;;  %s503_s30 = scalar_lea.hbm %s694_s1, 256 }
  0x15   :  { %s30_s27 = sshll.u32 %s580_s26, 4  ;;  %p504_p8 = scmp.ne.s32.totalorder %s694_s1, %s503_s30  ;;  %s31_s27 = int_to_ptr.vmem [resolvable:$true] %s30_s27 }
  0x16   :  { %p507_p9 = scmp.lt.u32.totalorder %s503_s30, %s694_s1 }
  0x18   :  { %p509_p10 = pnand %p507_p9, %p504_p8 }
  0x1a   :  { %512 = shalt.err (!%p509_p10)
}
  0x1b   :  { %s513_s8 = scalar_lea.vmem %s31_s27, 256  ;;  %p518_p12 = scmp.lt.s32.totalorder %s31_s27, %s31_s27 }
  0x1c   :  { %p514_p11 = scmp.ne.s32.totalorder %s31_s27, %s513_s8  ;;  %p519_p13 = scmp.lt.s32.totalorder %s513_s8, %s513_s8 }
  0x1e   :  { %p520_p0 = por %p519_p13, %p518_p12 }
  0x20   :  { %p521_p1 = pnand %p520_p0, %p514_p11 }
  0x22   :  { %524 = shalt.err (!%p521_p1)
}
  0x23   :  { %36 = dma.hbm_to_vmem [thread:$0]  %s694_s1, 256, %s31_s27, [#allocation6], %s578_s22, %s578_s22, %s579_s23  }
  0x24   :  { %569 = dma.done.wait [#allocation3], 256  }
  0x25   :  { %570 = vsyncadd [#allocation3], 4294967040 }
  0x26   :  { %571 = dma.done.wait [#allocation6], 256  }
  0x27   :  { %572 = vsyncadd [#allocation6], 4294967040  ;;  %v581_v0 = vmov 0.0   ;;  %vm582_vm0 = vmmov 0   ;;  %vm47_vm1 = vcmask 261120   ;;  %v45_v1 = vld [vmem:[#allocation5] sm:$0xff]  ;;  %v200_v11 = vlaneseq }
  0x28   :  { %453 = vmatprep.subr.mxu0 %v581_v0  ;;  %455 = vmatprep.mubr.msk.f32.mxu0 %vm582_vm0, %v581_v0  ;;  %v46_v2 = vld [vmem:[#allocation5 + $0x8] sm:$0xff]  ;;  %v43_v3 = vld [vmem:[#allocation2] sm:$0xff]  ;;  %v44_v4 = vld [vmem:[#allocation2 + $0x8] sm:$0xff]  ;;  %vm202_vm2 = vcmask 64512   ;;  %s583_s1 = smov [#allocation8]  }
  0x29   :  { %458 = vmatprep.subr.mxu1 %v581_v0  ;;  %460 = vmatprep.mubr.msk.f32.mxu1 %vm582_vm0, %v581_v0  ;;  %v201_v12 = vand.u32 127, %v200_v11  ;;  %s420_s10 = sshll.u32 %s583_s1, 4  ;;  %s421_s10 = int_to_ptr.vmem [resolvable:$true] %s420_s10 }
  0x2a   :  { %454 = vmatpush3.xpose.msk.msra.mxu0 %vm47_vm1, %v45_v1  ;;  %459 = vmatpush3.xpose.msk.msra.mxu1 %vm47_vm1, %v46_v2  ;;  %s525_s11 = scalar_lea.vmem %s421_s10, 256  ;;  %p530_p3 = scmp.lt.s32.totalorder %s421_s10, %s421_s10 }
  0x2b   :  { %463 = vmatprep.subr.mxu0 %v581_v0  ;;  %468 = vmatprep.subr.mxu1 %v581_v0  ;;  %p526_p2 = scmp.ne.s32.totalorder %s421_s10, %s525_s11  ;;  %p531_p4 = scmp.lt.s32.totalorder %s525_s11, %s525_s11 }
  0x2d   :  { %456 = vmatmul.mubr.msk.f32.vlgmr.msra.gmra.mrb[0].mxu0 %vm47_vm1, %v43_v3  ;;  %461 = vmatmul.mubr.msk.f32.vlgmr.msra.gmra.mrb[0].mxu1 %vm47_vm1, %v44_v4  ;;  %p532_p5 = por %p531_p4, %p530_p3 }
  0x2e   :  { %464 = vmatpush3.msra.mxu0 %v45_v1  ;;  %465 = vmatprep.mubr.msk.f32.mxu0 %vm582_vm0, %v581_v0 }
  0x2f   :  { %469 = vmatpush3.msra.mxu1 %v46_v2  ;;  %470 = vmatprep.mubr.msk.f32.mxu1 %vm582_vm0, %v581_v0  ;;  %p533_p6 = pnand %p532_p5, %p526_p2 }
 0x100   :  { %v120_v5 = vpop.f32.mrb[0].mxu0  ;;  %v196_v6 = vpop.f32.mrb[0].mxu1 }
 0x101   :  { %v457_v7 = vpop.f32.mrb[1].mxu0  ;;  %v203_v8 = vsel %vm202_vm2, %v120_v5, -inf  ;;  %v462_v9 = vpop.f32.mrb[1].mxu1  ;;  %v206_v10 = vsel %vm202_vm2, %v196_v6, -inf }
 0x102   :  { %204 = vmax.xlane.f32.xlu0 %v203_v8 }
 0x106   :  { %207 = vmax.xlane.f32.xlu0 %v206_v10 }
 0x18f   :  { %v205_v13 = vpop.xlane.xlu0 %204 }
 0x190   :  { %vm209_vm3 = vcmp.eq.f32.partialorder %v120_v5, %v205_v13 }
 0x191   :  { %v211_v14 = vsel %vm209_vm3, %v201_v12, 8 }
 0x192   :  { %v213_v15 = vsel %vm202_vm2, %v211_v14, 2147483647 }
 0x193   :  { %v208_v16 = vpop.xlane.xlu0 %207  ;;  %v215_v17 = vshra.s32 %v213_v15, 16  ;;  %v214_v23 = vand.u32 65535, %v213_v15 }
 0x194   :  { %vm210_vm4 = vcmp.eq.f32.partialorder %v196_v6, %v208_v16 }
 0x195   :  { %v212_v18 = vsel %vm210_vm4, %v201_v12, 8  ;;  %v217_v19 = vcvt.s32.f32 %v215_v17  ;;  %v216_v25 = vcvt.s32.f32 %v214_v23 }
 0x196   :  { %v228_v20 = vsel %vm202_vm2, %v212_v18, 2147483647 }
 0x197   :  { %218 = vmin.xlane.f32.xlu1 %v217_v19  ;;  %v230_v21 = vshra.s32 %v228_v20, 16  ;;  %v229_v26 = vand.u32 65535, %v228_v20 }
 0x199   :  { %v232_v22 = vcvt.s32.f32 %v230_v21  ;;  %v231_v29 = vcvt.s32.f32 %v229_v26 }
 0x19b   :  { %233 = vmin.xlane.f32.xlu1 %v232_v22 }
 0x224   :  { %v219_v24 = vpop.xlane.xlu1 %218 }
 0x225   :  { %vm220_vm5 = vcmp.eq.f32.partialorder %v217_v19, %v219_v24  ;;  %v225_v31 = vcvt.f32.s32 %v219_v24 }
 0x226   :  { %v221_v27 = vsel %vm220_vm5, %v216_v25, inf }
 0x227   :  { %222 = vmin.xlane.f32.xlu0 %v221_v27  ;;  %v226_v33 = vshll.u32 %v225_v31, 16 }
 0x228   :  { %v234_v28 = vpop.xlane.xlu1 %233 }
 0x229   :  { %vm235_vm6 = vcmp.eq.f32.partialorder %v232_v22, %v234_v28  ;;  %v240_v34 = vcvt.f32.s32 %v234_v28 }
 0x22a   :  { %v236_v30 = vsel %vm235_vm6, %v231_v29, inf }
 0x22b   :  { %237 = vmin.xlane.f32.xlu1 %v236_v30  ;;  %v241_v38 = vshll.u32 %v240_v34, 16 }
 0x2b4   :  { %v223_v32 = vpop.xlane.xlu0 %222 }
 0x2b5   :  { %v224_v35 = vcvt.f32.s32 %v223_v32 }
 0x2b7   :  { %v227_v36 = vadd.s32 %v226_v33, %v224_v35 }
 0x2b8   :  { %v238_v37 = vpop.xlane.xlu1 %237 }
 0x2b9   :  { %vm243_vm7 = vcmp.ge.s32.totalorder %v227_v36, 8  ;;  %v239_v39 = vcvt.f32.s32 %v238_v37 }
 0x2ba   :  { %v245_v40 = vsel %vm243_vm7, 0, %v227_v36 }
 0x2bb   :  { %vm247_vm8 = vcmp.eq.s32.totalorder %v201_v12, %v245_v40  ;;  %v242_v41 = vadd.s32 %v241_v38, %v239_v39 }
 0x2bc   :  { %v441_v42 = vsel %vm247_vm8, 1.0, %v581_v0 }
 0x2bd   :  { %vm244_vm9 = vcmp.ge.s32.totalorder %v242_v41, 8  ;;  %466 = vmatmul.mubr.msk.f32.vlgmr.msra.gmra.mrb[2].mxu0 %vm202_vm2, %v441_v42  ;;  %399 = vst.msk [vmem:[#allocation8] sm:$0xff] %vm202_vm2, %v441_v42 }
 0x2be   :  { %v246_v43 = vsel %vm244_vm9, 0, %v242_v41 }
 0x2bf   :  { %vm248_vm10 = vcmp.eq.s32.totalorder %v201_v12, %v246_v43 }
 0x2c0   :  { %v442_v44 = vsel %vm248_vm10, 1.0, %v581_v0 }
 0x2c1   :  { %471 = vmatmul.mubr.msk.f32.vlgmr.msra.gmra.mrb[2].mxu1 %vm202_vm2, %v442_v44  ;;  %400 = vst.msk [vmem:[#allocation8 + $0x8] sm:$0xff] %vm202_vm2, %v442_v44 }
 0x2c2   :  { %536 = shalt.err (!%p533_p6)
}
 0x2c3   :  { %s537_s14 = scalar_lea.hbm %s696_s3, 256 }
 0x2c4   :  { %p538_p7 = scmp.ne.s32.totalorder %s696_s3, %s537_s14  ;;  %p541_p8 = scmp.lt.u32.totalorder %s537_s14, %s696_s3 }
 0x2c6   :  { %p543_p9 = pnand %p541_p8, %p538_p7 }
 0x2c8   :  { %546 = shalt.err (!%p543_p9)
}
 0x2c9   :  { %426 = dma.vmem_to_hbm [thread:$0]  %s421_s10, 256, %s696_s3, [#allocation9], %s578_s22, %s578_s22, %s579_s23  }
 0x2ca   :  { %s584_s21 = smov [#allocation7]  }
 0x2cb   :  { %s408_s24 = sshll.u32 %s584_s21, 4  ;;  %s409_s24 = int_to_ptr.vmem [resolvable:$true] %s408_s24 }
 0x2cc   :  { %s547_s25 = scalar_lea.vmem %s409_s24, 256  ;;  %p552_p11 = scmp.lt.s32.totalorder %s409_s24, %s409_s24 }
 0x2cd   :  { %p548_p10 = scmp.ne.s32.totalorder %s409_s24, %s547_s25  ;;  %p553_p12 = scmp.lt.s32.totalorder %s547_s25, %s547_s25 }
 0x2cf   :  { %p554_p13 = por %p553_p12, %p552_p11 }
 0x2d1   :  { %p555_p0 = pnand %p554_p13, %p548_p10 }
 0x390   :  { %v322_v45 = vpop.f32.mrb[2].mxu0 }
 0x391   :  { %401 = vst.msk [vmem:[#allocation7] sm:$0xff] %vm47_vm1, %v322_v45  ;;  %v467_v46 = vpop.f32.mrb[3].mxu0 }
 0x394   :  { %v395_v47 = vpop.f32.mrb[2].mxu1 }
 0x395   :  { %402 = vst.msk [vmem:[#allocation7 + $0x8] sm:$0xff] %vm47_vm1, %v395_v47  ;;  %v472_v48 = vpop.f32.mrb[3].mxu1 }
 0x396   :  { %558 = shalt.err (!%p555_p0)
}
 0x397   :  { %s559_s27 = scalar_lea.hbm %s695_s2, 256 }
 0x398   :  { %p560_p1 = scmp.ne.s32.totalorder %s695_s2, %s559_s27  ;;  %p563_p2 = scmp.lt.u32.totalorder %s559_s27, %s695_s2 }
 0x39a   :  { %p565_p3 = pnand %p563_p2, %p560_p1 }
 0x39c   :  { %568 = shalt.err (!%p565_p3)
}
 0x39d   :  { %414 = dma.vmem_to_hbm [thread:$0]  %s409_s24, 256, %s695_s2, [#allocation4], %s578_s22, %s578_s22, %s579_s23  }
 0x39e   :  { %573 = dma.done.wait [#allocation4], 256  }
 0x39f   :  { %574 = vsyncadd [#allocation4], 4294967040 }
 0x3a0   :  { %575 = dma.done.wait [#allocation9], 256  }
 0x3a1   :  { %576 = vsyncadd [#allocation9], 4294967040 }
 0x3a2   :  { %433 = vsyncpa [#allocation3], 1 }
 0x3a3   :  { %434 = vsyncpa [#allocation6], 1 }
 0x3a4   :  { %435 = vsyncpa [#allocation4], 1 }
 0x3a5   :  { %436 = vsyncpa [#allocation9], 1 }

</bundles_post_ra>
